<compile_context>
chip_gen: v6e
topology: v6e:2x2x1
jax: 0.10.0
libtpu: 0.0.40
codegen_flags: <defaults>
</compile_context>

<pallas_src>
import functools

import jax
import jax.numpy as jnp
from jax.experimental import pallas as pl
from jax.experimental.pallas import tpu as pltpu


def _round_up(x, m):
    return (x + m - 1) // m * m


def _pad2d(a, rows, cols):
    pr, pc = rows - a.shape[0], cols - a.shape[1]
    if pr == 0 and pc == 0:
        return a
    return jnp.pad(a, ((0, pr), (0, pc)))


def _pad_row(a, cols):
    if a.shape[0] != cols:
        a = jnp.pad(a, (0, cols - a.shape[0]))
    return a.reshape(1, cols)


def _layernorm(z, g, b, d_model, eps):
    """LayerNorm over the unpadded feature axis (padded cols of z are 0)."""
    dm = jnp.float32(d_model)
    mean = jnp.sum(z, axis=-1, keepdims=True) / dm
    cent = z - mean
    if d_model != z.shape[-1]:
        col = jax.lax.broadcasted_iota(jnp.int32, z.shape, 1)
        cent_m = jnp.where(col < d_model, cent, 0.0)
    else:
        cent_m = cent
    var = jnp.sum(cent_m * cent_m, axis=-1, keepdims=True) / dm
    norm = cent * jax.lax.rsqrt(var + eps)          # rsqrt -> EUP slot
    return norm * g.astype(jnp.float32) + b.astype(jnp.float32)


# ----------------------------------------------------------------------------
# Resident-weight kernel: 1-D grid over row tiles, W1/W2 stay in VMEM.
# ----------------------------------------------------------------------------
def _ffn_kernel_resident(x_ref, w1_ref, b1_ref, w2_ref, b2_ref, g_ref, beta_ref,
                         o_ref, *, d_model, eps):
    x = x_ref[...]                                     # (tm, Dp), input dtype
    h = jnp.dot(x, w1_ref[...], preferred_element_type=jnp.float32)
    h = jnp.maximum(h + b1_ref[...].astype(jnp.float32), 0.0)
    y = jnp.dot(h.astype(w2_ref.dtype), w2_ref[...],
                preferred_element_type=jnp.float32)
    # TODO(synk): dropout is identity here (eval mode); training-mode dropout
    # would use pltpu.prng_seed / pltpu.prng_random_bits per tile.
    z = y + b2_ref[...].astype(jnp.float32) + x.astype(jnp.float32)
    o_ref[...] = _layernorm(z, g_ref[...], beta_ref[...], d_model, eps
                            ).astype(o_ref.dtype)


# ----------------------------------------------------------------------------
# k-tiled kernel: grid = (row_tiles, d_ff_tiles); d_ff axis accumulates.
# ----------------------------------------------------------------------------
def _ffn_kernel_ktiled(x_ref, w1_ref, b1_ref, w2_ref, b2_ref, g_ref, beta_ref,
                       o_ref, acc_ref, *, d_model, eps):
    k = pl.program_id(1)
    nk = pl.num_programs(1)

    @pl.when(k == 0)
    def _init():
        acc_ref[...] = jnp.zeros_like(acc_ref)

    x = x_ref[...]                                     # (tm, Dp)
    h = jnp.dot(x, w1_ref[...], preferred_element_type=jnp.float32)
    h = jnp.maximum(h + b1_ref[...].astype(jnp.float32), 0.0)
    acc_ref[...] += jnp.dot(h.astype(w2_ref.dtype), w2_ref[...],
                            preferred_element_type=jnp.float32)

    @pl.when(k == nk - 1)
    def _finalize():
        res = x_ref[...].astype(jnp.float32)
        z = acc_ref[...] + b2_ref[...].astype(jnp.float32) + res
        o_ref[...] = _layernorm(z, g_ref[...], beta_ref[...], d_model, eps
                                ).astype(o_ref.dtype)


def positionwise_feed_forward(x, w1, b1, w2, b2, gamma, beta, *,
                              eps=1e-6, tm=None, tk=None,
                              vmem_capacity_bytes=None):
    """x: (B, S, d_model). w1: (d_model, d_ff) [pre-transposed], w2: (d_ff, d_model).

    Pass x / w1 / w2 in bf16 for full MXU rate; LayerNorm & residual are f32.
    Set tk explicitly to force the k-tiled (d_ff-chunked) path.
    """
    B, S, d_model = x.shape
    d_ff = w1.shape[1]
    M = B * S

    Dp = _round_up(d_model, 128)                 # lane-dense feature dim

    # --- generation-aware VMEM budget ----------------------------------------
    if vmem_capacity_bytes is None:
        try:
            vmem_capacity_bytes = int(pltpu.get_tpu_info().vmem_capacity_bytes)
        except Exception:
            vmem_capacity_bytes = 64 << 20       # conservative (v7x per-TC)
    headroom = 8 << 20                           # Mosaic internals / DMA descs
    budget = max(vmem_capacity_bytes - headroom, 16 << 20)

    xb = x.dtype.itemsize
    wb = w1.dtype.itemsize
    ob = x.dtype.itemsize
    b1b = b1.dtype.itemsize
    b2b = b2.dtype.itemsize

    # --- row tile candidates (256-aligned for the v6e/v7x MXU when possible) -
    row_align = 256 if M >= 256 else 8
    Mcap = _round_up(M, row_align)
    if tm is not None:
        tm_candidates = [min(_round_up(tm, row_align), Mcap)]
    else:
        tm_candidates = [t for t in (2048, 1024, 512, 256) if t <= Mcap]
        if not tm_candidates:
            tm_candidates = [Mcap]

    x2 = x.reshape(M, d_model)

    # --- resident-weight path (weights DMA'd once, no accumulator) -----------
    Fp_res = _round_up(d_ff, 128)

    def _resident_vmem(tm_):
        return (2 * tm_ * Dp * xb                          # x tile
                + 2 * (Dp * Fp_res * wb + Fp_res * b1b)    # W1 + b1
                + 2 * (Fp_res * Dp * wb + Dp * b2b)        # W2 + b2
                + 2 * 2 * Dp * 4                           # gamma, beta
                + 2 * tm_ * Dp * ob                        # out tile
                + tm_ * Fp_res * 4 + tm_ * Fp_res * wb     # h f32 + cast copy
                + tm_ * Dp * 4)                            # z / LN temps

    resident_tm = None
    if tk is None:
        for t in tm_candidates:
            if _resident_vmem(t) <= budget:
                resident_tm = t
                break

    if resident_tm is not None:
        tm_sel = resident_tm
        Mp = _round_up(M, tm_sel)
        xp = _pad2d(x2, Mp, Dp)
        w1p = _pad2d(w1, Dp, Fp_res)
        b1p = _pad_row(b1, Fp_res)
        w2p = _pad2d(w2, Fp_res, Dp)
        b2p = _pad_row(b2, Dp)
        gp = _pad_row(gamma, Dp)
        bp = _pad_row(beta, Dp)

        vmem_needed = _resident_vmem(tm_sel)
        vmem_limit = int(min(max(vmem_needed + (4 << 20), 32 << 20),
                             max(vmem_capacity_bytes - (2 << 20),
                                 vmem_needed + (2 << 20))))

        cost = pl.CostEstimate(
            flops=int(4.0 * M * d_model * d_ff),
            transcendentals=int(M),
            bytes_accessed=int(Mp * Dp * (xb + ob)
                               + 2 * Dp * Fp_res * wb        # W1+W2, read once
                               + Fp_res * b1b + Dp * b2b + 2 * Dp * 4))

        kernel = functools.partial(_ffn_kernel_resident, d_model=d_model, eps=eps)
        out = pl.pallas_call(
            kernel,
            out_shape=jax.ShapeDtypeStruct((Mp, Dp), x.dtype),
            grid_spec=pltpu.PrefetchScalarGridSpec(
                num_scalar_prefetch=0,
                grid=(Mp // tm_sel,),
                in_specs=[
                    pl.BlockSpec((tm_sel, Dp), lambda i: (i, 0)),   # x tile
                    pl.BlockSpec((Dp, Fp_res), lambda i: (0, 0)),   # W1 (resident)
                    pl.BlockSpec((1, Fp_res), lambda i: (0, 0)),    # b1
                    pl.BlockSpec((Fp_res, Dp), lambda i: (0, 0)),   # W2 (resident)
                    pl.BlockSpec((1, Dp), lambda i: (0, 0)),        # b2
                    pl.BlockSpec((1, Dp), lambda i: (0, 0)),        # gamma
                    pl.BlockSpec((1, Dp), lambda i: (0, 0)),        # beta
                ],
                out_specs=pl.BlockSpec((tm_sel, Dp), lambda i: (i, 0)),
            ),
            compiler_params=pltpu.CompilerParams(
                dimension_semantics=("parallel",),
                vmem_limit_bytes=vmem_limit,
            ),
            cost_estimate=cost,
        )(xp, w1p, b1p, w2p, b2p, gp, bp)
        return out[:M, :d_model].reshape(B, S, d_model)

    # --- k-tiled fallback path ------------------------------------------------
    Fp_cap = _round_up(d_ff, 128)
    if tk is not None:
        tk_candidates = [min(_round_up(tk, 128), Fp_cap)]
    else:
        tk_candidates = [t for t in (1024, 512, 256, 128) if t <= Fp_cap]
        if not tk_candidates:
            tk_candidates = [Fp_cap]

    def _ktiled_vmem(tm_, tk_):
        return (2 * tm_ * Dp * xb                          # x tile
                + 2 * (Dp * tk_ * wb + tk_ * b1b)          # W1 chunk + b1
                + 2 * (tk_ * Dp * wb + Dp * b2b)           # W2 chunk + b2
                + 2 * 2 * Dp * 4                           # gamma, beta
                + 2 * tm_ * Dp * ob                        # out tile
                + tm_ * Dp * 4                             # acc scratch (f32)
                + tm_ * tk_ * 4 + tm_ * tk_ * wb           # h f32 + cast copy
                + tm_ * Dp * 4)                            # finalize temps

    best = None
    for t in tm_candidates:
        for kk in tk_candidates:
            if _ktiled_vmem(t, kk) <= budget:
                score = (t * kk, t)
                if best is None or score > best[0]:
                    best = (score, t, kk)
    if best is None:
        tm_sel, tk_sel = tm_candidates[-1], tk_candidates[-1]   # last resort
    else:
        tm_sel, tk_sel = best[1], best[2]

    Mp = _round_up(M, tm_sel)
    Fp = _round_up(d_ff, tk_sel)

    xp = _pad2d(x2, Mp, Dp)
    w1p = _pad2d(w1, Dp, Fp)
    b1p = _pad_row(b1, Fp)
    w2p = _pad2d(w2, Fp, Dp)
    b2p = _pad_row(b2, Dp)
    gp = _pad_row(gamma, Dp)
    bp = _pad_row(beta, Dp)

    n_row = Mp // tm_sel
    vmem_needed = _ktiled_vmem(tm_sel, tk_sel)
    vmem_limit = int(min(max(vmem_needed + (4 << 20), 32 << 20),
                         max(vmem_capacity_bytes - (2 << 20),
                             vmem_needed + (2 << 20))))

    cost = pl.CostEstimate(
        flops=int(4.0 * M * d_model * d_ff),
        transcendentals=int(M),
        bytes_accessed=int(Mp * Dp * (xb + ob)
                           + n_row * 2 * Dp * Fp * wb        # W1+W2 per row tile
                           + n_row * (Fp * b1b + Dp * b2b + 2 * Dp * 4)))

    kernel = functools.partial(_ffn_kernel_ktiled, d_model=d_model, eps=eps)
    out = pl.pallas_call(
        kernel,
        out_shape=jax.ShapeDtypeStruct((Mp, Dp), x.dtype),
        grid_spec=pltpu.PrefetchScalarGridSpec(
            num_scalar_prefetch=0,
            grid=(Mp // tm_sel, Fp // tk_sel),
            in_specs=[
                pl.BlockSpec((tm_sel, Dp), lambda i, k: (i, 0)),   # x tile
                pl.BlockSpec((Dp, tk_sel), lambda i, k: (0, k)),   # W1 chunk
                pl.BlockSpec((1, tk_sel), lambda i, k: (0, k)),    # b1 chunk
                pl.BlockSpec((tk_sel, Dp), lambda i, k: (k, 0)),   # W2 chunk
                pl.BlockSpec((1, Dp), lambda i, k: (0, 0)),        # b2
                pl.BlockSpec((1, Dp), lambda i, k: (0, 0)),        # gamma
                pl.BlockSpec((1, Dp), lambda i, k: (0, 0)),        # beta
            ],
            out_specs=pl.BlockSpec((tm_sel, Dp), lambda i, k: (i, 0)),
            scratch_shapes=[pltpu.VMEM((tm_sel, Dp), jnp.float32)],
        ),
        compiler_params=pltpu.CompilerParams(
            dimension_semantics=("parallel", "arbitrary"),
            vmem_limit_bytes=vmem_limit,
        ),
        cost_estimate=cost,
    )(xp, w1p, b1p, w2p, b2p, gp, bp)

    return out[:M, :d_model].reshape(B, S, d_model)


def _reference(x, w1, b1, w2, b2, gamma, beta):
    res = x
    h = jax.nn.relu(x @ w1 + b1)
    y = h @ w2 + b2
    z = y + res
    mean = jnp.mean(z, axis=-1, keepdims=True)
    var = jnp.mean((z - mean) ** 2, axis=-1, keepdims=True)
    return (z - mean) / jnp.sqrt(var + 1e-6) * gamma + beta


if __name__ == "__main__":
    B, S, d_model, d_ff = 2, 8, 32, 64

    key = jax.random.PRNGKey(0)
    kx, k1, kb1, k2, kb2 = jax.random.split(key, 5)

    x = jax.random.normal(kx, (B, S, d_model), dtype=jnp.float32)
    # nn.Linear(d_model, d_ff): weight (d_ff, d_model) -> stored transposed
    w1 = jax.random.normal(k1, (d_model, d_ff), dtype=jnp.float32) * 0.1
    b1 = jax.random.normal(kb1, (d_ff,), dtype=jnp.float32) * 0.1
    # nn.Linear(d_ff, d_model): weight (d_model, d_ff) -> stored transposed
    w2 = jax.random.normal(k2, (d_ff, d_model), dtype=jnp.float32) * 0.1
    b2 = jax.random.normal(kb2, (d_model,), dtype=jnp.float32) * 0.1
    # nn.LayerNorm(d_model) default init
    gamma = jnp.ones((d_model,), dtype=jnp.float32)
    beta = jnp.zeros((d_model,), dtype=jnp.float32)

    ref = _reference(x, w1, b1, w2, b2, gamma, beta)

    # 1) resident-weight fast path, f32 — exact comparison vs reference.
    out = positionwise_feed_forward(x, w1, b1, w2, b2, gamma, beta)
    out = jax.block_until_ready(out)
    assert out.shape == (B, S, d_model)
    assert jnp.allclose(out, ref, atol=1e-4, rtol=1e-4), "mismatch (resident f32)"

    # 2) bf16 production path — bf16 x / weights, f32 accumulate + f32 LayerNorm.
    out_bf16 = positionwise_feed_forward(
        x.astype(jnp.bfloat16),
        w1.astype(jnp.bfloat16), b1,
        w2.astype(jnp.bfloat16), b2,
        gamma, beta,
    )
    out_bf16 = jax.block_until_ready(out_bf16)
    assert out_bf16.shape == (B, S, d_model)
    assert jnp.allclose(out_bf16.astype(jnp.float32), ref, atol=1e-1, rtol=1e-1), \
        "mismatch (resident bf16)"

    # 3) forced k-tiled (d_ff-chunked) path with a wider hidden layer.
    d_ff2 = 256
    k3, kb3, k4, kb4 = jax.random.split(jax.random.PRNGKey(1), 4)
    w1b = jax.random.normal(k3, (d_model, d_ff2), dtype=jnp.float32) * 0.1
    b1v = jax.random.normal(kb3, (d_ff2,), dtype=jnp.float32) * 0.1
    w2b = jax.random.normal(k4, (d_ff2, d_model), dtype=jnp.float32) * 0.1
    b2v = jax.random.normal(kb4, (d_model,), dtype=jnp.float32) * 0.1
    ref2 = _reference(x, w1b, b1v, w2b, b2v, gamma, beta)
    out2 = positionwise_feed_forward(x, w1b, b1v, w2b, b2v, gamma, beta, tk=128)
    out2 = jax.block_until_ready(out2)
    assert out2.shape == (B, S, d_model)
    assert jnp.allclose(out2, ref2, atol=1e-4, rtol=1e-4), "mismatch (k-tiled f32)"

    print("KERNEL_OK")
</pallas_src>

<mosaic_0001>
module attributes {stable_mosaic.version = 11 : i64} {
  func.func @_ffn_kernel_resident(%arg0: i32, %arg1: memref<16x128xf32, #tpu.memory_space<vmem>>, %arg2: memref<128x128xf32, #tpu.memory_space<vmem>>, %arg3: memref<1x128xf32, #tpu.memory_space<vmem>>, %arg4: memref<128x128xf32, #tpu.memory_space<vmem>>, %arg5: memref<1x128xf32, #tpu.memory_space<vmem>>, %arg6: memref<1x128xf32, #tpu.memory_space<vmem>>, %arg7: memref<1x128xf32, #tpu.memory_space<vmem>>, %arg8: memref<16x128xf32, #tpu.memory_space<vmem>>) attributes {dimension_semantics = [#tpu.dimension_semantics<parallel>], iteration_bounds = array<i64: 1>, scalar_prefetch = 0 : i64, scratch_operands = 0 : i64, tpu.core_type = #tpu.core_type<tc>, window_params = [{transform_indices = @transform_0, window_bounds = array<i64: 16, 128>}, {pipeline_mode = #tpu.pipeline_mode<synchronous>, transform_indices = @transform_1, window_bounds = array<i64: 128, 128>}, {pipeline_mode = #tpu.pipeline_mode<synchronous>, transform_indices = @transform_2, window_bounds = array<i64: 1, 128>}, {pipeline_mode = #tpu.pipeline_mode<synchronous>, transform_indices = @transform_3, window_bounds = array<i64: 128, 128>}, {pipeline_mode = #tpu.pipeline_mode<synchronous>, transform_indices = @transform_4, window_bounds = array<i64: 1, 128>}, {pipeline_mode = #tpu.pipeline_mode<synchronous>, transform_indices = @transform_5, window_bounds = array<i64: 1, 128>}, {pipeline_mode = #tpu.pipeline_mode<synchronous>, transform_indices = @transform_6, window_bounds = array<i64: 1, 128>}, {transform_indices = @transform_7, window_bounds = array<i64: 16, 128>}]} {
    %c0 = arith.constant 0 : index
    %c0_0 = arith.constant 0 : index
    %0 = vector.load %arg1[%c0, %c0_0] : memref<16x128xf32, #tpu.memory_space<vmem>>, vector<16x128xf32>
    %c0_1 = arith.constant 0 : index
    %c0_2 = arith.constant 0 : index
    %1 = vector.load %arg2[%c0_1, %c0_2] : memref<128x128xf32, #tpu.memory_space<vmem>>, vector<128x128xf32>
    %cst = arith.constant dense<0.000000e+00> : vector<16x128xf32>
    %2 = tpu.matmul %0, %1, %cst {dimension_numbers = #tpu.dot_dimension_numbers<[1], [0], [0], [1], [0, 0, 1, 1], [], []>} : vector<16x128xf32>, vector<128x128xf32>, vector<16x128xf32> -> vector<16x128xf32>
    %c0_3 = arith.constant 0 : index
    %c0_4 = arith.constant 0 : index
    %3 = vector.load %arg3[%c0_3, %c0_4] : memref<1x128xf32, #tpu.memory_space<vmem>>, vector<1x128xf32>
    %4 = vector.broadcast %3 : vector<1x128xf32> to vector<16x128xf32>
    %5 = arith.addf %2, %4 : vector<16x128xf32>
    %cst_5 = arith.constant 0.000000e+00 : f32
    %6 = vector.broadcast %cst_5 : f32 to vector<16x128xf32>
    %7 = arith.maximumf %5, %6 : vector<16x128xf32>
    %c0_6 = arith.constant 0 : index
    %c0_7 = arith.constant 0 : index
    %8 = vector.load %arg4[%c0_6, %c0_7] : memref<128x128xf32, #tpu.memory_space<vmem>>, vector<128x128xf32>
    %cst_8 = arith.constant dense<0.000000e+00> : vector<16x128xf32>
    %9 = tpu.matmul %7, %8, %cst_8 {dimension_numbers = #tpu.dot_dimension_numbers<[1], [0], [0], [1], [0, 0, 1, 1], [], []>} : vector<16x128xf32>, vector<128x128xf32>, vector<16x128xf32> -> vector<16x128xf32>
    %c0_9 = arith.constant 0 : index
    %c0_10 = arith.constant 0 : index
    %10 = vector.load %arg5[%c0_9, %c0_10] : memref<1x128xf32, #tpu.memory_space<vmem>>, vector<1x128xf32>
    %11 = vector.broadcast %10 : vector<1x128xf32> to vector<16x128xf32>
    %12 = arith.addf %9, %11 : vector<16x128xf32>
    %13 = arith.addf %12, %0 : vector<16x128xf32>
    %c0_11 = arith.constant 0 : index
    %c0_12 = arith.constant 0 : index
    %14 = vector.load %arg6[%c0_11, %c0_12] : memref<1x128xf32, #tpu.memory_space<vmem>>, vector<1x128xf32>
    %c0_13 = arith.constant 0 : index
    %c0_14 = arith.constant 0 : index
    %15 = vector.load %arg7[%c0_13, %c0_14] : memref<1x128xf32, #tpu.memory_space<vmem>>, vector<1x128xf32>
    %cst_15 = arith.constant dense<0.000000e+00> : vector<16xf32>
    %16 = vector.multi_reduction <add>, %13, %cst_15 [1] : vector<16x128xf32> to vector<16xf32>
    %17 = vector.shape_cast %16 : vector<16xf32> to vector<16x1xf32>
    %cst_16 = arith.constant 3.200000e+01 : f32
    %18 = vector.broadcast %cst_16 : f32 to vector<16x1xf32>
    %19 = arith.divf %17, %18 : vector<16x1xf32>
    %20 = vector.broadcast %19 : vector<16x1xf32> to vector<16x128xf32>
    %21 = arith.subf %13, %20 : vector<16x128xf32>
    %22 = tpu.iota {dimensions = array<i32: 1>} : vector<16x128xi32>
    %c32_i32 = arith.constant 32 : i32
    %23 = vector.broadcast %c32_i32 : i32 to vector<16x128xi32>
    %24 = arith.cmpi slt, %22, %23 : vector<16x128xi32>
    %cst_17 = arith.constant 0.000000e+00 : f32
    %25 = vector.broadcast %cst_17 : f32 to vector<16x128xf32>
    %26 = arith.select %24, %21, %25 : vector<16x128xi1>, vector<16x128xf32>
    %27 = arith.mulf %26, %26 : vector<16x128xf32>
    %cst_18 = arith.constant dense<0.000000e+00> : vector<16xf32>
    %28 = vector.multi_reduction <add>, %27, %cst_18 [1] : vector<16x128xf32> to vector<16xf32>
    %29 = vector.shape_cast %28 : vector<16xf32> to vector<16x1xf32>
    %cst_19 = arith.constant 3.200000e+01 : f32
    %30 = vector.broadcast %cst_19 : f32 to vector<16x1xf32>
    %31 = arith.divf %29, %30 : vector<16x1xf32>
    %cst_20 = arith.constant 9.99999997E-7 : f32
    %32 = vector.broadcast %cst_20 : f32 to vector<16x1xf32>
    %33 = arith.addf %31, %32 : vector<16x1xf32>
    %34 = math.rsqrt %33 : vector<16x1xf32>
    %35 = vector.broadcast %34 : vector<16x1xf32> to vector<16x128xf32>
    %36 = arith.mulf %21, %35 : vector<16x128xf32>
    %37 = vector.broadcast %14 : vector<1x128xf32> to vector<16x128xf32>
    %38 = arith.mulf %36, %37 : vector<16x128xf32>
    %39 = vector.broadcast %15 : vector<1x128xf32> to vector<16x128xf32>
    %40 = arith.addf %38, %39 : vector<16x128xf32>
    %c0_21 = arith.constant 0 : index
    %c0_22 = arith.constant 0 : index
    %41 = vector.load %arg8[%c0_21, %c0_22] : memref<16x128xf32, #tpu.memory_space<vmem>>, vector<16x128xf32>
    tpu.vector_store %arg8[%c0_21, %c0_22], %40 {strides = array<i32>} : memref<16x128xf32, #tpu.memory_space<vmem>>, vector<16x128xf32>,
    return
  }
  func.func @transform_0(%arg0: i32) -> (i32, i32) {
    %c0_i32 = arith.constant 0 : i32
    %c0_i32_0 = arith.constant 0 : i32
    return %arg0, %c0_i32 : i32, i32
  }
  func.func @transform_1(%arg0: i32) -> (i32, i32) {
    %c0_i32 = arith.constant 0 : i32
    %c0_i32_0 = arith.constant 0 : i32
    %c0_i32_1 = arith.constant 0 : i32
    return %c0_i32, %c0_i32_0 : i32, i32
  }
  func.func @transform_2(%arg0: i32) -> (i32, i32) {
    %c0_i32 = arith.constant 0 : i32
    %c0_i32_0 = arith.constant 0 : i32
    %c0_i32_1 = arith.constant 0 : i32
    return %c0_i32, %c0_i32_0 : i32, i32
  }
  func.func @transform_3(%arg0: i32) -> (i32, i32) {
    %c0_i32 = arith.constant 0 : i32
    %c0_i32_0 = arith.constant 0 : i32
    %c0_i32_1 = arith.constant 0 : i32
    return %c0_i32, %c0_i32_0 : i32, i32
  }
  func.func @transform_4(%arg0: i32) -> (i32, i32) {
    %c0_i32 = arith.constant 0 : i32
    %c0_i32_0 = arith.constant 0 : i32
    %c0_i32_1 = arith.constant 0 : i32
    return %c0_i32, %c0_i32_0 : i32, i32
  }
  func.func @transform_5(%arg0: i32) -> (i32, i32) {
    %c0_i32 = arith.constant 0 : i32
    %c0_i32_0 = arith.constant 0 : i32
    %c0_i32_1 = arith.constant 0 : i32
    return %c0_i32, %c0_i32_0 : i32, i32
  }
  func.func @transform_6(%arg0: i32) -> (i32, i32) {
    %c0_i32 = arith.constant 0 : i32
    %c0_i32_0 = arith.constant 0 : i32
    %c0_i32_1 = arith.constant 0 : i32
    return %c0_i32, %c0_i32_0 : i32, i32
  }
  func.func @transform_7(%arg0: i32) -> (i32, i32) {
    %c0_i32 = arith.constant 0 : i32
    %c0_i32_0 = arith.constant 0 : i32
    return %arg0, %c0_i32 : i32, i32
  }
}

</mosaic_0001>

<bundles_post_ra>
// kernel: tpu_custom_call.1
= control target key start
LH: loop header
LB: loop body
LE: loop exit
PB: predicated region body
PF: predicated region fallthrough
CT: control target
= control target key end

     0   :  { %12 = vsyncpa [#allocation3], 0  ;;  %s628_s0 = inlined_call_operand.hbm [shape: f32[16,128], index: 0, kind: input, shape index: {}]   ;;  %s629_s1 = inlined_call_operand.hbm [shape: f32[128,128], index: 1, kind: input, shape index: {}]   ;;  %s630_s2 = inlined_call_operand.vmem [shape: f32[1,128], index: 2, kind: input, shape index: {}]   ;;  %s631_s3 = inlined_call_operand.hbm [shape: f32[128,128], index: 3, kind: input, shape index: {}]   ;;  %s632_s4 = inlined_call_operand.vmem [shape: f32[1,128], index: 4, kind: input, shape index: {}]   ;;  %s633_s5 = inlined_call_operand.vmem [shape: f32[1,128], index: 5, kind: input, shape index: {}]   ;;  %s634_s6 = inlined_call_operand.vmem [shape: f32[1,128], index: 6, kind: input, shape index: {}]   ;;  %s635_s7 = inlined_call_operand.hbm [shape: f32[16,128], index: 7, kind: output, shape index: {}]  }
   0x1   :  { %13 = vsyncpa [#allocation6], 0 }
   0x2   :  { %14 = vsyncpa [#allocation4], 0  ;;  %s542_s24 = smov [#allocation5]   ;;  %s543_s26 = smov [#allocation2]  }
   0x3   :  { %s32_s25 = sshll.u32 %s542_s24, 4  ;;  %s20_s27 = sshll.u32 %s543_s26, 4  ;;  %s33_s25 = int_to_ptr.vmem [resolvable:$true] %s32_s25  ;;  %s21_s27 = int_to_ptr.vmem [resolvable:$true] %s20_s27 }
   0x4   :  { %s464_s28 = scalar_lea.vmem %s33_s25, 2048  ;;  %p469_p1 = scmp.lt.s32.totalorder %s33_s25, %s33_s25 }
   0x5   :  { %p465_p0 = scmp.ne.s32.totalorder %s33_s25, %s464_s28  ;;  %p470_p2 = scmp.lt.s32.totalorder %s464_s28, %s464_s28 }
   0x7   :  { %p471_p3 = por %p470_p2, %p469_p1 }
   0x9   :  { %p472_p4 = pnand %p471_p3, %p465_p0 }
   0xb   :  { %475 = shalt.err (!%p472_p4)
}
   0xc   :  { %s544_s29 = smov 128   ;;  %s545_s30 = smov 8  }
   0xd   :  { %38 = dma.hbm_to_vmem [thread:$0]  %s629_s1, 2048, %s33_s25, [#allocation6], %s544_s29, %s544_s29, %s545_s30  }
   0xe   :  { %s484_s10 = scalar_lea.vmem %s21_s27, 256  ;;  %p489_p6 = scmp.lt.s32.totalorder %s21_s27, %s21_s27 }
   0xf   :  { %p485_p5 = scmp.ne.s32.totalorder %s21_s27, %s484_s10  ;;  %p490_p7 = scmp.lt.s32.totalorder %s484_s10, %s484_s10 }
  0x11   :  { %p491_p8 = por %p490_p7, %p489_p6 }
  0x13   :  { %p492_p9 = pnand %p491_p8, %p485_p5 }
  0x15   :  { %495 = shalt.err (!%p492_p9)
}
  0x16   :  { %26 = dma.hbm_to_vmem [thread:$0]  %s628_s0, 256, %s21_s27, [#allocation3], %s544_s29, %s544_s29, %s545_s30  }
  0x17   :  { %s546_s13 = smov [#allocation7]  }
  0x18   :  { %s46_s14 = sshll.u32 %s546_s13, 4  ;;  %s47_s14 = int_to_ptr.vmem [resolvable:$true] %s46_s14 }
  0x19   :  { %s504_s15 = scalar_lea.vmem %s47_s14, 2048  ;;  %p509_p11 = scmp.lt.s32.totalorder %s47_s14, %s47_s14 }
  0x1a   :  { %p505_p10 = scmp.ne.s32.totalorder %s47_s14, %s504_s15  ;;  %p510_p12 = scmp.lt.s32.totalorder %s504_s15, %s504_s15 }
  0x1c   :  { %p511_p13 = por %p510_p12, %p509_p11 }
  0x1e   :  { %p512_p0 = pnand %p511_p13, %p505_p10 }
  0x20   :  { %515 = shalt.err (!%p512_p0)
}
  0x21   :  { %52 = dma.hbm_to_vmem [thread:$0]  %s631_s3, 2048, %s47_s14, [#allocation6], %s544_s29, %s544_s29, %s545_s30  }
  0x22   :  { %536 = dma.done.wait [#allocation3], 256  }
  0x23   :  { %537 = vsyncadd [#allocation3], 4294967040 }
  0x24   :  { %538 = dma.done.wait [#allocation6], 4096  }
  0x25   :  { %539 = vsyncadd [#allocation6], 4294963200  ;;  %v85_v0 = vld [vmem:[#allocation5 + $0x78] sm:$0xff]  ;;  %v84_v1 = vld [vmem:[#allocation5 + $0x70] sm:$0xff]  ;;  %v281_v48 = vlaneseq  ;;  %s547_s21 = smov [#allocation8]  }
  0x26   :  { %376 = vmatprep.subr.mxu0 %v85_v0  ;;  %v83_v2 = vld [vmem:[#allocation5 + $0x68] sm:$0xff]  ;;  %v82_v3 = vld [vmem:[#allocation5 + $0x60] sm:$0xff]  ;;  %v606_v4 = vld [vmem:[#allocation2] sm:$0xff]  ;;  %s323_s22 = sshll.u32 %s547_s21, 4  ;;  %s324_s22 = int_to_ptr.vmem [resolvable:$true] %s323_s22 }
  0x27   :  { %377 = vmatpush3.msra.mxu0 %v85_v0  ;;  %v81_v5 = vld [vmem:[#allocation5 + $0x58] sm:$0xff]  ;;  %408 = vmatprep.mubr.f32.mxu0 %v606_v4  ;;  %v184_v7 = vld [vmem:[#allocation7 + $0x70] sm:$0xff]  ;;  %v183_v9 = vld [vmem:[#allocation7 + $0x68] sm:$0xff]  ;;  %v282_v49 = vand.u32 127, %v281_v48  ;;  %s516_s23 = scalar_lea.vmem %s324_s22, 256  ;;  %p521_p2 = scmp.lt.s32.totalorder %s324_s22, %s324_s22 }
  0x28   :  { %378 = vmatprep.subr.mxu0 %v84_v1  ;;  %v185_v6 = vld [vmem:[#allocation7 + $0x78] sm:$0xff]  ;;  %v80_v8 = vld [vmem:[#allocation5 + $0x50] sm:$0xff]  ;;  %v79_v10 = vld [vmem:[#allocation5 + $0x48] sm:$0xff]  ;;  %p517_p1 = scmp.ne.s32.totalorder %s324_s22, %s516_s23  ;;  %p522_p3 = scmp.lt.s32.totalorder %s516_s23, %s516_s23 }
  0x29   :  { %379 = vmatpush3.msra.mxu0 %v84_v1  ;;  %411 = vmatprep.subr.mxu1 %v185_v6  ;;  %v182_v11 = vld [vmem:[#allocation7 + $0x60] sm:$0xff]  ;;  %v181_v13 = vld [vmem:[#allocation7 + $0x58] sm:$0xff]  ;;  %v180_v15 = vld [vmem:[#allocation7 + $0x50] sm:$0xff]  ;;  %vm283_vm0 = vcmp.lt.s32.totalorder %v282_v49, 32 }
  0x2a   :  { %380 = vmatprep.subr.mxu0 %v83_v2  ;;  %412 = vmatpush3.msra.mxu1 %v185_v6  ;;  %v78_v12 = vld [vmem:[#allocation5 + $0x40] sm:$0xff]  ;;  %v77_v14 = vld [vmem:[#allocation5 + $0x38] sm:$0xff]  ;;  %v76_v16 = vld [vmem:[#allocation5 + $0x30] sm:$0xff]  ;;  %p523_p4 = por %p522_p3, %p521_p2 }
  0x2b   :  { %381 = vmatpush3.msra.mxu0 %v83_v2  ;;  %413 = vmatprep.subr.mxu1 %v184_v7  ;;  %v179_v17 = vld [vmem:[#allocation7 + $0x48] sm:$0xff]  ;;  %v178_v19 = vld [vmem:[#allocation7 + $0x40] sm:$0xff]  ;;  %v177_v21 = vld [vmem:[#allocation7 + $0x38] sm:$0xff] }
  0x2c   :  { %382 = vmatprep.subr.mxu0 %v82_v3  ;;  %414 = vmatpush3.msra.mxu1 %v184_v7  ;;  %v75_v18 = vld [vmem:[#allocation5 + $0x28] sm:$0xff]  ;;  %v74_v20 = vld [vmem:[#allocation5 + $0x20] sm:$0xff]  ;;  %v73_v22 = vld [vmem:[#allocation5 + $0x18] sm:$0xff]  ;;  %p524_p5 = pnand %p523_p4, %p517_p1 }
  0x2d   :  { %383 = vmatpush3.msra.mxu0 %v82_v3  ;;  %415 = vmatprep.subr.mxu1 %v183_v9  ;;  %v176_v23 = vld [vmem:[#allocation7 + $0x30] sm:$0xff]  ;;  %v175_v25 = vld [vmem:[#allocation7 + $0x28] sm:$0xff]  ;;  %v174_v27 = vld [vmem:[#allocation7 + $0x20] sm:$0xff] }
  0x2e   :  { %384 = vmatprep.subr.mxu0 %v81_v5  ;;  %416 = vmatpush3.msra.mxu1 %v183_v9  ;;  %v72_v24 = vld [vmem:[#allocation5 + $0x10] sm:$0xff]  ;;  %v71_v26 = vld [vmem:[#allocation5 + $0x8] sm:$0xff]  ;;  %v70_v28 = vld [vmem:[#allocation5] sm:$0xff] }
  0x2f   :  { %385 = vmatpush3.msra.mxu0 %v81_v5  ;;  %417 = vmatprep.subr.mxu1 %v182_v11  ;;  %v69_v29 = vld [vmem:[#allocation2 + $0x8] sm:$0xff]  ;;  %v172_v31 = vld [vmem:[#allocation7 + $0x10] sm:$0xff]  ;;  %v171_v32 = vld [vmem:[#allocation7 + $0x8] sm:$0xff] }
  0x30   :  { %386 = vmatprep.subr.mxu0 %v80_v8  ;;  %418 = vmatpush3.msra.mxu1 %v182_v11  ;;  %v173_v30 = vld [vmem:[#allocation7 + $0x18] sm:$0xff]  ;;  %v170_v33 = vld [vmem:[#allocation7] sm:$0xff]  ;;  %v336_v34 = vld [vmem:[%s630_s2] ss:$0 sm:$0xff] }
  0x31   :  { %387 = vmatpush3.msra.mxu0 %v80_v8  ;;  %419 = vmatprep.subr.mxu1 %v181_v13  ;;  %v337_v42 = vld [vmem:[%s632_s4] ss:$0 sm:$0xff] }
  0x32   :  { %388 = vmatprep.subr.mxu0 %v79_v10  ;;  %420 = vmatpush3.msra.mxu1 %v181_v13  ;;  %v338_v3 = vld [vmem:[%s633_s5] ss:$0 sm:$0xff] }
  0x33   :  { %389 = vmatpush3.msra.mxu0 %v79_v10  ;;  %421 = vmatprep.subr.mxu1 %v180_v15  ;;  %v339_v5 = vld [vmem:[%s634_s6] ss:$0 sm:$0xff] }
  0x34   :  { %390 = vmatprep.subr.mxu0 %v78_v12  ;;  %422 = vmatpush3.msra.mxu1 %v180_v15 }
  0x35   :  { %391 = vmatpush3.msra.mxu0 %v78_v12  ;;  %423 = vmatprep.subr.mxu1 %v179_v17 }
  0x36   :  { %392 = vmatprep.subr.mxu0 %v77_v14  ;;  %424 = vmatpush3.msra.mxu1 %v179_v17 }
  0x37   :  { %393 = vmatpush3.msra.mxu0 %v77_v14  ;;  %425 = vmatprep.subr.mxu1 %v178_v19 }
  0x38   :  { %394 = vmatprep.subr.mxu0 %v76_v16  ;;  %426 = vmatpush3.msra.mxu1 %v178_v19 }
  0x39   :  { %395 = vmatpush3.msra.mxu0 %v76_v16  ;;  %427 = vmatprep.subr.mxu1 %v177_v21 }
  0x3a   :  { %396 = vmatprep.subr.mxu0 %v75_v18  ;;  %428 = vmatpush3.msra.mxu1 %v177_v21 }
  0x3b   :  { %397 = vmatpush3.msra.mxu0 %v75_v18  ;;  %429 = vmatprep.subr.mxu1 %v176_v23 }
  0x3c   :  { %398 = vmatprep.subr.mxu0 %v74_v20  ;;  %430 = vmatpush3.msra.mxu1 %v176_v23 }
  0x3d   :  { %399 = vmatpush3.msra.mxu0 %v74_v20  ;;  %431 = vmatprep.subr.mxu1 %v175_v25 }
  0x3e   :  { %400 = vmatprep.subr.mxu0 %v73_v22  ;;  %432 = vmatpush3.msra.mxu1 %v175_v25 }
  0x3f   :  { %401 = vmatpush3.msra.mxu0 %v73_v22  ;;  %433 = vmatprep.subr.mxu1 %v174_v27 }
  0x40   :  { %402 = vmatprep.subr.mxu0 %v72_v24  ;;  %434 = vmatpush3.msra.mxu1 %v174_v27 }
  0x41   :  { %403 = vmatpush3.msra.mxu0 %v72_v24  ;;  %435 = vmatprep.subr.mxu1 %v173_v30 }
  0x42   :  { %404 = vmatprep.subr.mxu0 %v71_v26  ;;  %436 = vmatpush3.msra.mxu1 %v173_v30 }
  0x43   :  { %405 = vmatpush3.msra.mxu0 %v71_v26  ;;  %437 = vmatprep.subr.mxu1 %v172_v31 }
  0x44   :  { %406 = vmatprep.subr.mxu0 %v70_v28  ;;  %438 = vmatpush3.msra.mxu1 %v172_v31 }
  0x45   :  { %407 = vmatpush3.msra.mxu0 %v70_v28  ;;  %439 = vmatprep.subr.mxu1 %v171_v32 }
  0x46   :  { %409 = vmatmul.mubr.f32.vlgmr.msra.gmra.mxu0 %v69_v29  ;;  %440 = vmatpush3.msra.mxu1 %v171_v32 }
  0x47   :  { %441 = vmatprep.subr.mxu1 %v170_v33 }
  0x48   :  { %442 = vmatpush3.msra.mxu1 %v170_v33 }
 0x106   :  { %v410_v35 = vpop.f32.mrf.mxu0 }
 0x107   :  { %v165_v36 = vadd.f32 %v410_v35, %v336_v34 }
 0x108   :  { %v159_v37 = vpop.f32.mrf.mxu0 }
 0x109   :  { %v160_v38 = vadd.f32 %v336_v34, %v159_v37  ;;  %v169_v40 = vmax.f32 %v165_v36, 0.0 }
 0x10b   :  { %v168_v39 = vmax.f32 %v160_v38, 0.0 }
 0x10d   :  { %443 = vmatprep.mubr.f32.mxu1 %v168_v39 }
 0x10e   :  { %444 = vmatmul.mubr.f32.vlgmr.msra.gmra.mxu1 %v169_v40 }
 0x1ce   :  { %v445_v41 = vpop.f32.mrf.mxu1 }
 0x1cf   :  { %v265_v45 = vadd.f32 %v445_v41, %v337_v42 }
 0x1d0   :  { %v259_v43 = vpop.f32.mrf.mxu1 }
 0x1d1   :  { %v260_v44 = vadd.f32 %v337_v42, %v259_v43  ;;  %v269_v47 = vadd.f32 %v265_v45, %v69_v29 }
 0x1d3   :  { %v268_v46 = vadd.f32 %v260_v44, %v606_v4 }
 0x1d5   :  { %272 = vadd.xlane.f32.xlu0 %v268_v46 }
 0x1d9   :  { %274 = vadd.xlane.f32.xlu0 %v269_v47 }
 0x25e   :  { %v273_v50 = vpop.xlane.xlu0 %272 }
 0x25f   :  { %v277_v51 = vmul.f32 0.03125, %v273_v50 }
 0x261   :  { %v279_v52 = vsub.f32 %v268_v46, %v277_v51 }
 0x262   :  { %v275_v53 = vpop.xlane.xlu0 %274 }
 0x263   :  { %v278_v54 = vmul.f32 0.03125, %v275_v53  ;;  %v284_v55 = vsel %vm283_vm0, %v279_v52, 0.0 }
 0x264   :  { %v286_v56 = vmul.f32 %v284_v55, %v284_v55 }
 0x265   :  { %v280_v57 = vsub.f32 %v269_v47, %v278_v54 }
 0x266   :  { %288 = vadd.xlane.f32.xlu1 %v286_v56 }
 0x267   :  { %v285_v58 = vsel %vm283_vm0, %v280_v57, 0.0 }
 0x268   :  { %v287_v59 = vmul.f32 %v285_v58, %v285_v58 }
 0x26a   :  { %290 = vadd.xlane.f32.xlu1 %v287_v59 }
 0x2ef   :  { %v289_v60 = vpop.xlane.xlu1 %288 }
 0x2f0   :  { %v292_v61 = vmul.f32 0.03125, %v289_v60 }
 0x2f2   :  { %v294_v62 = vadd.f32 1e-06, %v292_v61 }
 0x2f3   :  { %v291_v63 = vpop.xlane.xlu1 %290 }
 0x2f4   :  { %452 = vrsqrt.f32 %v294_v62  ;;  %v293_v0 = vmul.f32 0.03125, %v291_v63 }
 0x2f6   :  { %v295_v1 = vadd.f32 1e-06, %v293_v0 }
 0x2f8   :  { %454 = vrsqrt.f32 %v295_v1 }
 0x301   :  { %v453_v2 = vpop.eup %452 }
 0x302   :  { %v298_v4 = vmul.f32 %v453_v2, %v279_v52 }
 0x304   :  { %v306_v6 = vmul.f32 %v338_v3, %v298_v4 }
 0x305   :  { %v455_v7 = vpop.eup %454 }
 0x306   :  { %v299_v8 = vmul.f32 %v455_v7, %v280_v57  ;;  %v314_v9 = vadd.f32 %v339_v5, %v306_v6 }
 0x308   :  { %v307_v10 = vmul.f32 %v338_v3, %v299_v8  ;;  %316 = vst [vmem:[#allocation8] sm:$0xff] %v314_v9 }
 0x30a   :  { %v315_v11 = vadd.f32 %v339_v5, %v307_v10 }
 0x30c   :  { %317 = vst [vmem:[#allocation8 + $0x8] sm:$0xff] %v315_v11 }
 0x30d   :  { %527 = shalt.err (!%p524_p5)
}
 0x30e   :  { %329 = dma.vmem_to_hbm [thread:$0]  %s324_s22, 256, %s635_s7, [#allocation4], %s544_s29, %s544_s29, %s545_s30  }
 0x30f   :  { %540 = dma.done.wait [#allocation4], 256  }
 0x310   :  { %541 = vsyncadd [#allocation4], 4294967040 }
 0x311   :  { %333 = vsyncpa [#allocation3], 1 }
 0x312   :  { %334 = vsyncpa [#allocation6], 1 }
 0x313   :  { %335 = vsyncpa [#allocation4], 1 }

</bundles_post_ra>
